<compile_context>
chip_gen: v7x
topology: tpu7x:2x2x1
jax: 0.10.0
libtpu: 0.0.40
codegen_flags: <defaults>
</compile_context>

<pallas_src>
import jax
import jax.numpy as jnp
from jax.experimental import pallas as pl
from jax.experimental.pallas import tpu as pltpu


def _rna_kernel(x_ref,        # (T, Mp, F)   Mp = round_up(G*B, 8)
                win_ref,      # (F, 6H)      [W_ih_fwd | W_ih_bwd]
                whh_ref,      # (H, 3H)      fused forward W_hh (r|z|n)
                wout_ref,     # (2H, O)
                bias_ref,     # (2, 4H)      row0 fwd, row1 bwd: [b_rz_folded | b_n_ih | b_hh_n]
                bout_ref,     # (1, O)
                out_ref,      # (O, Mp)      lane-dense output slab
                gi_scr):      # VMEM scratch (T, Mp, 3H) — hoisted fwd gate projections
    T, Mp, F = x_ref.shape
    H = whh_ref.shape[0]
    H3 = 3 * H

    bias_f = bias_ref[0:1, :H3]            # (1, 3H) fwd in-proj biases (r/z folded)
    bias_b = bias_ref[1:2, :H3]            # (1, 3H) bwd in-proj biases (r/z folded)
    bhn_f = bias_ref[0:1, H3:H3 + H]       # (1, H)  fwd b_hh of the n gate
    bhn_b = bias_ref[1:2, H3:H3 + H]       # (1, H)  bwd b_hh of the n gate

    # ---- hoisted input projection for BOTH directions: ONE matmul over all
    # T*Mp rows, off the serial critical path.
    x2 = x_ref[...].reshape(T * Mp, F)
    gi = jnp.dot(x2, win_ref[...], preferred_element_type=jnp.float32)   # (T*Mp, 6H)

    # Forward gate projections (with folded r/z biases) parked in VMEM scratch
    # so they do not occupy vregs across the unrolled recurrence.
    gi_scr[...] = (gi[:, :H3] + bias_f).reshape(T, Mp, H3)

    # ---- backward direction FIRST (so `gi` dies before the forward loop):
    # the model only reads out[:, -1, H:], i.e. the backward hidden after its
    # FIRST step (input x[T-1], h0 = 0). With h0 = 0 the hidden-to-hidden
    # matmul contributes only its bias -> no W_hh_reverse matmul at all.
    gib = gi[(T - 1) * Mp:, H3:] + bias_b                                  # (Mp, 3H)
    rzb = jax.nn.sigmoid(gib[:, :2 * H])
    rb = rzb[:, :H]
    zb = rzb[:, H:]
    nb = jnp.tanh(gib[:, 2 * H:] + rb * bhn_b)
    h_bwd = (1.0 - zb) * nb                                                # z * h0 == 0

    # ---- forward recurrence: fully unrolled, ONE fused (Mp,H)@(H,3H) MXU op
    # per step on the dependency chain; gate split is cheap lane slicing.
    whh = whh_ref[...]
    h = jnp.zeros((Mp, H), jnp.float32)
    for t in range(T):
        gi_t = gi_scr[t]                                                   # (Mp, 3H)
        gh = jnp.dot(h, whh, preferred_element_type=jnp.float32)          # (Mp, 3H)
        rz = jax.nn.sigmoid(gi_t[:, :2 * H] + gh[:, :2 * H])
        r = rz[:, :H]
        z = rz[:, H:]
        n = jnp.tanh(gi_t[:, 2 * H:] + r * (gh[:, 2 * H:] + bhn_f))
        h = (1.0 - z) * n + z * h
    h_fwd = h

    # ---- final Linear(2H -> O), concat-free (wout split per direction);
    # single lane-dense (O, Mp) store.
    wout = wout_ref[...]
    y = (jnp.dot(h_fwd, wout[:H], preferred_element_type=jnp.float32)
         + jnp.dot(h_bwd, wout[H:], preferred_element_type=jnp.float32)
         + bout_ref[...])                                                  # (Mp, O)
    if y.shape[1] == 1:
        out_ref[...] = y.reshape(1, Mp).astype(out_ref.dtype)              # free view for O == 1
    else:
        out_ref[...] = jnp.transpose(y).astype(out_ref.dtype)


def rna_regress_forward(genes, params):
    """genes: (G, B, T, F) float32 -> (B, G, out_size) float32."""
    G, B, T, F = genes.shape
    H = params["whf"].shape[0]
    O = params["wout"].shape[1]
    M = G * B
    Mp = ((M + 7) // 8) * 8          # pad to a full sublane tile

    # (G, B, T, F) -> (T, G*B, F): all genes batched into the matmul M dim.
    x = jnp.transpose(genes, (2, 0, 1, 3)).reshape(T, M, F)
    if Mp != M:
        x = jnp.pad(x, ((0, 0), (0, Mp - M), (0, 0)))   # zero rows -> finite garbage, sliced off below

    # Pre-fold b_ih + b_hh for the r/z gates (h-independent); the n-gate's
    # b_hh stays separate (it sits inside the r*(...) term).
    def fold(bi, bh):
        return jnp.concatenate([bi[:, :2 * H] + bh[:, :2 * H], bi[:, 2 * H:]], axis=1)

    bias = jnp.concatenate(
        [jnp.concatenate([fold(params["bif"], params["bhf"]), params["bhf"][:, 2 * H:]], axis=1),
         jnp.concatenate([fold(params["bib"], params["bhb"]), params["bhb"][:, 2 * H:]], axis=1)],
        axis=0)                                          # (2, 4H)

    w_in = jnp.concatenate([params["wif"], params["wib"]], axis=1)   # (F, 6H)
    w_hh = params["whf"]                                             # (H, 3H) fused fwd
    w_out = params["wout"]                                           # (2H, O)
    bout = params["bout"]                                            # (1, O)

    vmem = pl.BlockSpec(memory_space=pltpu.MemorySpace.VMEM)
    out_t = pl.pallas_call(
        _rna_kernel,
        out_shape=jax.ShapeDtypeStruct((O, Mp), jnp.float32),
        in_specs=[vmem] * 6,
        out_specs=vmem,
        scratch_shapes=[pltpu.VMEM((T, Mp, 3 * H), jnp.float32)],
    )(x, w_in, w_hh, w_out, bias, bout)

    # (O, Mp) -> drop padding rows -> (M, O) -> (B, G, O) PyTorch layout.
    out = jnp.transpose(out_t[:, :M])
    return jnp.transpose(out.reshape(G, B, O), (1, 0, 2))


# ----------------------- pure-JAX reference (for checking) -----------------------
def _gru_cell_ref(x_t, h, wi, wh, bi, bh):
    H = h.shape[-1]
    gi = x_t @ wi + bi
    gh = h @ wh + bh
    r = jax.nn.sigmoid(gi[:, :H] + gh[:, :H])
    z = jax.nn.sigmoid(gi[:, H:2 * H] + gh[:, H:2 * H])
    n = jnp.tanh(gi[:, 2 * H:] + r * gh[:, 2 * H:])
    return (1.0 - z) * n + z * h


def rna_regress_reference(genes, p):
    G, B, T, F = genes.shape
    H = p["whf"].shape[0]
    encs = []
    for g in range(G):
        x = genes[g]                       # (B, T, F)
        # full forward pass
        h = jnp.zeros((B, H), jnp.float32)
        for t in range(T):
            h = _gru_cell_ref(x[:, t], h, p["wif"], p["whf"], p["bif"], p["bhf"])
        # full backward pass, then take the output at the last time position
        hb = jnp.zeros((B, H), jnp.float32)
        bwd_outs = []
        for t in range(T - 1, -1, -1):
            hb = _gru_cell_ref(x[:, t], hb, p["wib"], p["whb"], p["bib"], p["bhb"])
            bwd_outs.append(hb)
        bwd_outs = bwd_outs[::-1]          # bwd_outs[t] = backward output at time t
        encs.append(jnp.concatenate([h, bwd_outs[-1]], axis=-1))
    x = jnp.stack(encs, axis=1)            # (B, G, 2H)
    return x @ p["wout"] + p["bout"]


# ----------------------------------- main -----------------------------------
def _init_params(key, F, H, O):
    ks = jax.random.split(key, 11)
    s_ih = 1.0 / jnp.sqrt(jnp.float32(H))
    init = lambda k, shape: (jax.random.uniform(k, shape, jnp.float32,
                                                minval=-1.0, maxval=1.0) * s_ih)
    return {
        "wif": init(ks[0], (F, 3 * H)),
        "whf": init(ks[1], (H, 3 * H)),
        "bif": init(ks[2], (1, 3 * H)),
        "bhf": init(ks[3], (1, 3 * H)),
        "wib": init(ks[4], (F, 3 * H)),
        "whb": init(ks[5], (H, 3 * H)),
        "bib": init(ks[6], (1, 3 * H)),
        "bhb": init(ks[7], (1, 3 * H)),
        "wout": init(ks[8], (2 * H, O)),
        "bout": init(ks[9], (1, O)),
    }


if __name__ == "__main__":
    G, B, T, F = 3, 2, 8, 4     # genes, batch, seq len, features
    H, O = 32, 1                # enc_size, out_size (lin_features = 2*H)

    key = jax.random.PRNGKey(0)
    k_x, k_p = jax.random.split(key)
    genes = jax.random.normal(k_x, (G, B, T, F), jnp.float32)
    params = _init_params(k_p, F, H, O)

    out = jax.block_until_ready(rna_regress_forward(genes, params))
    ref = jax.block_until_ready(rna_regress_reference(genes, params))

    assert out.shape == (B, G, O), out.shape
    assert jnp.allclose(out, ref, atol=1e-5, rtol=1e-5), (
        "mismatch vs reference: max abs err "
        f"{float(jnp.max(jnp.abs(out - ref)))}")
    print("KERNEL_OK")
</pallas_src>

<mosaic_0001>
module attributes {stable_mosaic.version = 11 : i64} {
  func.func @_rna_kernel(%arg0: memref<8x8x4xf32, #tpu.memory_space<vmem>>, %arg1: memref<4x192xf32, #tpu.memory_space<vmem>>, %arg2: memref<32x96xf32, #tpu.memory_space<vmem>>, %arg3: memref<64x1xf32, #tpu.memory_space<vmem>>, %arg4: memref<2x128xf32, #tpu.memory_space<vmem>>, %arg5: memref<1x1xf32, #tpu.memory_space<vmem>>, %arg6: memref<1x8xf32, #tpu.memory_space<vmem>>, %arg7: memref<8x8x96xf32, #tpu.memory_space<vmem>>) attributes {dimension_semantics = [], scalar_prefetch = 0 : i64, scratch_operands = 1 : i64, tpu.core_type = #tpu.core_type<tc>} {
    %c0 = arith.constant 0 : index
    %c0_0 = arith.constant 0 : index
    %0 = vector.load %arg4[%c0, %c0_0] : memref<2x128xf32, #tpu.memory_space<vmem>>, vector<1x96xf32>
    %c1 = arith.constant 1 : index
    %c0_1 = arith.constant 0 : index
    %1 = vector.load %arg4[%c1, %c0_1] : memref<2x128xf32, #tpu.memory_space<vmem>>, vector<1x96xf32>
    %c0_2 = arith.constant 0 : index
    %c96 = arith.constant 96 : index
    %2 = vector.load %arg4[%c0_2, %c96] : memref<2x128xf32, #tpu.memory_space<vmem>>, vector<1x32xf32>
    %c1_3 = arith.constant 1 : index
    %c96_4 = arith.constant 96 : index
    %3 = vector.load %arg4[%c1_3, %c96_4] : memref<2x128xf32, #tpu.memory_space<vmem>>, vector<1x32xf32>
    %c0_5 = arith.constant 0 : index
    %c0_6 = arith.constant 0 : index
    %c0_7 = arith.constant 0 : index
    %4 = vector.load %arg0[%c0_5, %c0_6, %c0_7] : memref<8x8x4xf32, #tpu.memory_space<vmem>>, vector<8x8x4xf32>
    %5 = vector.shape_cast %4 : vector<8x8x4xf32> to vector<64x4xf32>
    %c0_8 = arith.constant 0 : index
    %c0_9 = arith.constant 0 : index
    %6 = vector.load %arg1[%c0_8, %c0_9] : memref<4x192xf32, #tpu.memory_space<vmem>>, vector<4x192xf32>
    %cst = arith.constant dense<0.000000e+00> : vector<64x192xf32>
    %7 = tpu.matmul %5, %6, %cst {dimension_numbers = #tpu.dot_dimension_numbers<[1], [0], [0], [1], [0, 0, 1, 1], [], []>} : vector<64x4xf32>, vector<4x192xf32>, vector<64x192xf32> -> vector<64x192xf32>
    %8 = vector.extract_strided_slice %7 {offsets = [0, 0], sizes = [64, 96], strides = [1, 1]} : vector<64x192xf32> to vector<64x96xf32>
    %9 = vector.broadcast %0 : vector<1x96xf32> to vector<64x96xf32>
    %10 = arith.addf %8, %9 : vector<64x96xf32>
    %11 = vector.shape_cast %10 : vector<64x96xf32> to vector<8x8x96xf32>
    %c0_10 = arith.constant 0 : index
    %c0_11 = arith.constant 0 : index
    %c0_12 = arith.constant 0 : index
    %12 = vector.load %arg7[%c0_10, %c0_11, %c0_12] : memref<8x8x96xf32, #tpu.memory_space<vmem>>, vector<8x8x96xf32>
    tpu.vector_store %arg7[%c0_10, %c0_11, %c0_12], %11 {strides = array<i32>} : memref<8x8x96xf32, #tpu.memory_space<vmem>>, vector<8x8x96xf32>,
    %13 = vector.extract_strided_slice %7 {offsets = [56, 96], sizes = [8, 96], strides = [1, 1]} : vector<64x192xf32> to vector<8x96xf32>
    %14 = vector.broadcast %1 : vector<1x96xf32> to vector<8x96xf32>
    %15 = arith.addf %13, %14 : vector<8x96xf32>
    %16 = vector.extract_strided_slice %15 {offsets = [0, 0], sizes = [8, 64], strides = [1, 1]} : vector<8x96xf32> to vector<8x64xf32>
    %17 = arith.negf %16 : vector<8x64xf32>
    %18 = math.exp %17 : vector<8x64xf32>
    %cst_13 = arith.constant 1.000000e+00 : f32
    %19 = vector.broadcast %cst_13 : f32 to vector<8x64xf32>
    %20 = arith.addf %19, %18 : vector<8x64xf32>
    %21 = arith.divf %19, %20 : vector<8x64xf32>
    %22 = vector.extract_strided_slice %21 {offsets = [0, 0], sizes = [8, 32], strides = [1, 1]} : vector<8x64xf32> to vector<8x32xf32>
    %23 = vector.extract_strided_slice %21 {offsets = [0, 32], sizes = [8, 32], strides = [1, 1]} : vector<8x64xf32> to vector<8x32xf32>
    %24 = vector.extract_strided_slice %15 {offsets = [0, 64], sizes = [8, 32], strides = [1, 1]} : vector<8x96xf32> to vector<8x32xf32>
    %25 = vector.broadcast %3 : vector<1x32xf32> to vector<8x32xf32>
    %26 = arith.mulf %22, %25 : vector<8x32xf32>
    %27 = arith.addf %24, %26 : vector<8x32xf32>
    %28 = math.tanh %27 : vector<8x32xf32>
    %cst_14 = arith.constant 1.000000e+00 : f32
    %29 = vector.broadcast %cst_14 : f32 to vector<8x32xf32>
    %30 = arith.subf %29, %23 : vector<8x32xf32>
    %31 = arith.mulf %30, %28 : vector<8x32xf32>
    %c0_15 = arith.constant 0 : index
    %c0_16 = arith.constant 0 : index
    %32 = vector.load %arg2[%c0_15, %c0_16] : memref<32x96xf32, #tpu.memory_space<vmem>>, vector<32x96xf32>
    %cst_17 = arith.constant 0.000000e+00 : f32
    %33 = vector.broadcast %cst_17 : f32 to vector<8x32xf32>
    %c0_18 = arith.constant 0 : index
    %c0_19 = arith.constant 0 : index
    %c0_20 = arith.constant 0 : index
    %34 = vector.load %arg7[%c0_18, %c0_19, %c0_20] : memref<8x8x96xf32, #tpu.memory_space<vmem>>, vector<1x8x96xf32>
    %35 = vector.shape_cast %34 : vector<1x8x96xf32> to vector<8x96xf32>
    %cst_21 = arith.constant dense<0.000000e+00> : vector<8x96xf32>
    %36 = tpu.matmul %33, %32, %cst_21 {dimension_numbers = #tpu.dot_dimension_numbers<[1], [0], [0], [1], [0, 0, 1, 1], [], []>} : vector<8x32xf32>, vector<32x96xf32>, vector<8x96xf32> -> vector<8x96xf32>
    %37 = vector.extract_strided_slice %35 {offsets = [0, 0], sizes = [8, 64], strides = [1, 1]} : vector<8x96xf32> to vector<8x64xf32>
    %38 = vector.extract_strided_slice %36 {offsets = [0, 0], sizes = [8, 64], strides = [1, 1]} : vector<8x96xf32> to vector<8x64xf32>
    %39 = arith.addf %37, %38 : vector<8x64xf32>
    %40 = arith.negf %39 : vector<8x64xf32>
    %41 = math.exp %40 : vector<8x64xf32>
    %cst_22 = arith.constant 1.000000e+00 : f32
    %42 = vector.broadcast %cst_22 : f32 to vector<8x64xf32>
    %43 = arith.addf %42, %41 : vector<8x64xf32>
    %44 = arith.divf %42, %43 : vector<8x64xf32>
    %45 = vector.extract_strided_slice %44 {offsets = [0, 0], sizes = [8, 32], strides = [1, 1]} : vector<8x64xf32> to vector<8x32xf32>
    %46 = vector.extract_strided_slice %44 {offsets = [0, 32], sizes = [8, 32], strides = [1, 1]} : vector<8x64xf32> to vector<8x32xf32>
    %47 = vector.extract_strided_slice %35 {offsets = [0, 64], sizes = [8, 32], strides = [1, 1]} : vector<8x96xf32> to vector<8x32xf32>
    %48 = vector.extract_strided_slice %36 {offsets = [0, 64], sizes = [8, 32], strides = [1, 1]} : vector<8x96xf32> to vector<8x32xf32>
    %49 = vector.broadcast %2 : vector<1x32xf32> to vector<8x32xf32>
    %50 = arith.addf %48, %49 : vector<8x32xf32>
    %51 = arith.mulf %45, %50 : vector<8x32xf32>
    %52 = arith.addf %47, %51 : vector<8x32xf32>
    %53 = math.tanh %52 : vector<8x32xf32>
    %cst_23 = arith.constant 1.000000e+00 : f32
    %54 = vector.broadcast %cst_23 : f32 to vector<8x32xf32>
    %55 = arith.subf %54, %46 : vector<8x32xf32>
    %56 = arith.mulf %55, %53 : vector<8x32xf32>
    %57 = arith.mulf %46, %33 : vector<8x32xf32>
    %58 = arith.addf %56, %57 : vector<8x32xf32>
    %c1_24 = arith.constant 1 : index
    %c0_25 = arith.constant 0 : index
    %c0_26 = arith.constant 0 : index
    %59 = vector.load %arg7[%c1_24, %c0_25, %c0_26] : memref<8x8x96xf32, #tpu.memory_space<vmem>>, vector<1x8x96xf32>
    %60 = vector.shape_cast %59 : vector<1x8x96xf32> to vector<8x96xf32>
    %cst_27 = arith.constant dense<0.000000e+00> : vector<8x96xf32>
    %61 = tpu.matmul %58, %32, %cst_27 {dimension_numbers = #tpu.dot_dimension_numbers<[1], [0], [0], [1], [0, 0, 1, 1], [], []>} : vector<8x32xf32>, vector<32x96xf32>, vector<8x96xf32> -> vector<8x96xf32>
    %62 = vector.extract_strided_slice %60 {offsets = [0, 0], sizes = [8, 64], strides = [1, 1]} : vector<8x96xf32> to vector<8x64xf32>
    %63 = vector.extract_strided_slice %61 {offsets = [0, 0], sizes = [8, 64], strides = [1, 1]} : vector<8x96xf32> to vector<8x64xf32>
    %64 = arith.addf %62, %63 : vector<8x64xf32>
    %65 = arith.negf %64 : vector<8x64xf32>
    %66 = math.exp %65 : vector<8x64xf32>
    %cst_28 = arith.constant 1.000000e+00 : f32
    %67 = vector.broadcast %cst_28 : f32 to vector<8x64xf32>
    %68 = arith.addf %67, %66 : vector<8x64xf32>
    %69 = arith.divf %67, %68 : vector<8x64xf32>
    %70 = vector.extract_strided_slice %69 {offsets = [0, 0], sizes = [8, 32], strides = [1, 1]} : vector<8x64xf32> to vector<8x32xf32>
    %71 = vector.extract_strided_slice %69 {offsets = [0, 32], sizes = [8, 32], strides = [1, 1]} : vector<8x64xf32> to vector<8x32xf32>
    %72 = vector.extract_strided_slice %60 {offsets = [0, 64], sizes = [8, 32], strides = [1, 1]} : vector<8x96xf32> to vector<8x32xf32>
    %73 = vector.extract_strided_slice %61 {offsets = [0, 64], sizes = [8, 32], strides = [1, 1]} : vector<8x96xf32> to vector<8x32xf32>
    %74 = vector.broadcast %2 : vector<1x32xf32> to vector<8x32xf32>
    %75 = arith.addf %73, %74 : vector<8x32xf32>
    %76 = arith.mulf %70, %75 : vector<8x32xf32>
    %77 = arith.addf %72, %76 : vector<8x32xf32>
    %78 = math.tanh %77 : vector<8x32xf32>
    %cst_29 = arith.constant 1.000000e+00 : f32
    %79 = vector.broadcast %cst_29 : f32 to vector<8x32xf32>
    %80 = arith.subf %79, %71 : vector<8x32xf32>
    %81 = arith.mulf %80, %78 : vector<8x32xf32>
    %82 = arith.mulf %71, %58 : vector<8x32xf32>
    %83 = arith.addf %81, %82 : vector<8x32xf32>
    %c2 = arith.constant 2 : index
    %c0_30 = arith.constant 0 : index
    %c0_31 = arith.constant 0 : index
    %84 = vector.load %arg7[%c2, %c0_30, %c0_31] : memref<8x8x96xf32, #tpu.memory_space<vmem>>, vector<1x8x96xf32>
    %85 = vector.shape_cast %84 : vector<1x8x96xf32> to vector<8x96xf32>
    %cst_32 = arith.constant dense<0.000000e+00> : vector<8x96xf32>
    %86 = tpu.matmul %83, %32, %cst_32 {dimension_numbers = #tpu.dot_dimension_numbers<[1], [0], [0], [1], [0, 0, 1, 1], [], []>} : vector<8x32xf32>, vector<32x96xf32>, vector<8x96xf32> -> vector<8x96xf32>
    %87 = vector.extract_strided_slice %85 {offsets = [0, 0], sizes = [8, 64], strides = [1, 1]} : vector<8x96xf32> to vector<8x64xf32>
    %88 = vector.extract_strided_slice %86 {offsets = [0, 0], sizes = [8, 64], strides = [1, 1]} : vector<8x96xf32> to vector<8x64xf32>
    %89 = arith.addf %87, %88 : vector<8x64xf32>
    %90 = arith.negf %89 : vector<8x64xf32>
    %91 = math.exp %90 : vector<8x64xf32>
    %cst_33 = arith.constant 1.000000e+00 : f32
    %92 = vector.broadcast %cst_33 : f32 to vector<8x64xf32>
    %93 = arith.addf %92, %91 : vector<8x64xf32>
    %94 = arith.divf %92, %93 : vector<8x64xf32>
    %95 = vector.extract_strided_slice %94 {offsets = [0, 0], sizes = [8, 32], strides = [1, 1]} : vector<8x64xf32> to vector<8x32xf32>
    %96 = vector.extract_strided_slice %94 {offsets = [0, 32], sizes = [8, 32], strides = [1, 1]} : vector<8x64xf32> to vector<8x32xf32>
    %97 = vector.extract_strided_slice %85 {offsets = [0, 64], sizes = [8, 32], strides = [1, 1]} : vector<8x96xf32> to vector<8x32xf32>
    %98 = vector.extract_strided_slice %86 {offsets = [0, 64], sizes = [8, 32], strides = [1, 1]} : vector<8x96xf32> to vector<8x32xf32>
    %99 = vector.broadcast %2 : vector<1x32xf32> to vector<8x32xf32>
    %100 = arith.addf %98, %99 : vector<8x32xf32>
    %101 = arith.mulf %95, %100 : vector<8x32xf32>
    %102 = arith.addf %97, %101 : vector<8x32xf32>
    %103 = math.tanh %102 : vector<8x32xf32>
    %cst_34 = arith.constant 1.000000e+00 : f32
    %104 = vector.broadcast %cst_34 : f32 to vector<8x32xf32>
    %105 = arith.subf %104, %96 : vector<8x32xf32>
    %106 = arith.mulf %105, %103 : vector<8x32xf32>
    %107 = arith.mulf %96, %83 : vector<8x32xf32>
    %108 = arith.addf %106, %107 : vector<8x32xf32>
    %c3 = arith.constant 3 : index
    %c0_35 = arith.constant 0 : index
    %c0_36 = arith.constant 0 : index
    %109 = vector.load %arg7[%c3, %c0_35, %c0_36] : memref<8x8x96xf32, #tpu.memory_space<vmem>>, vector<1x8x96xf32>
    %110 = vector.shape_cast %109 : vector<1x8x96xf32> to vector<8x96xf32>
    %cst_37 = arith.constant dense<0.000000e+00> : vector<8x96xf32>
    %111 = tpu.matmul %108, %32, %cst_37 {dimension_numbers = #tpu.dot_dimension_numbers<[1], [0], [0], [1], [0, 0, 1, 1], [], []>} : vector<8x32xf32>, vector<32x96xf32>, vector<8x96xf32> -> vector<8x96xf32>
    %112 = vector.extract_strided_slice %110 {offsets = [0, 0], sizes = [8, 64], strides = [1, 1]} : vector<8x96xf32> to vector<8x64xf32>
    %113 = vector.extract_strided_slice %111 {offsets = [0, 0], sizes = [8, 64], strides = [1, 1]} : vector<8x96xf32> to vector<8x64xf32>
    %114 = arith.addf %112, %113 : vector<8x64xf32>
    %115 = arith.negf %114 : vector<8x64xf32>
    %116 = math.exp %115 : vector<8x64xf32>
    %cst_38 = arith.constant 1.000000e+00 : f32
    %117 = vector.broadcast %cst_38 : f32 to vector<8x64xf32>
    %118 = arith.addf %117, %116 : vector<8x64xf32>
    %119 = arith.divf %117, %118 : vector<8x64xf32>
    %120 = vector.extract_strided_slice %119 {offsets = [0, 0], sizes = [8, 32], strides = [1, 1]} : vector<8x64xf32> to vector<8x32xf32>
    %121 = vector.extract_strided_slice %119 {offsets = [0, 32], sizes = [8, 32], strides = [1, 1]} : vector<8x64xf32> to vector<8x32xf32>
    %122 = vector.extract_strided_slice %110 {offsets = [0, 64], sizes = [8, 32], strides = [1, 1]} : vector<8x96xf32> to vector<8x32xf32>
    %123 = vector.extract_strided_slice %111 {offsets = [0, 64], sizes = [8, 32], strides = [1, 1]} : vector<8x96xf32> to vector<8x32xf32>
    %124 = vector.broadcast %2 : vector<1x32xf32> to vector<8x32xf32>
    %125 = arith.addf %123, %124 : vector<8x32xf32>
    %126 = arith.mulf %120, %125 : vector<8x32xf32>
    %127 = arith.addf %122, %126 : vector<8x32xf32>
    %128 = math.tanh %127 : vector<8x32xf32>
    %cst_39 = arith.constant 1.000000e+00 : f32
    %129 = vector.broadcast %cst_39 : f32 to vector<8x32xf32>
    %130 = arith.subf %129, %121 : vector<8x32xf32>
    %131 = arith.mulf %130, %128 : vector<8x32xf32>
    %132 = arith.mulf %121, %108 : vector<8x32xf32>
    %133 = arith.addf %131, %132 : vector<8x32xf32>
    %c4 = arith.constant 4 : index
    %c0_40 = arith.constant 0 : index
    %c0_41 = arith.constant 0 : index
    %134 = vector.load %arg7[%c4, %c0_40, %c0_41] : memref<8x8x96xf32, #tpu.memory_space<vmem>>, vector<1x8x96xf32>
    %135 = vector.shape_cast %134 : vector<1x8x96xf32> to vector<8x96xf32>
    %cst_42 = arith.constant dense<0.000000e+00> : vector<8x96xf32>
    %136 = tpu.matmul %133, %32, %cst_42 {dimension_numbers = #tpu.dot_dimension_numbers<[1], [0], [0], [1], [0, 0, 1, 1], [], []>} : vector<8x32xf32>, vector<32x96xf32>, vector<8x96xf32> -> vector<8x96xf32>
    %137 = vector.extract_strided_slice %135 {offsets = [0, 0], sizes = [8, 64], strides = [1, 1]} : vector<8x96xf32> to vector<8x64xf32>
    %138 = vector.extract_strided_slice %136 {offsets = [0, 0], sizes = [8, 64], strides = [1, 1]} : vector<8x96xf32> to vector<8x64xf32>
    %139 = arith.addf %137, %138 : vector<8x64xf32>
    %140 = arith.negf %139 : vector<8x64xf32>
    %141 = math.exp %140 : vector<8x64xf32>
    %cst_43 = arith.constant 1.000000e+00 : f32
    %142 = vector.broadcast %cst_43 : f32 to vector<8x64xf32>
    %143 = arith.addf %142, %141 : vector<8x64xf32>
    %144 = arith.divf %142, %143 : vector<8x64xf32>
    %145 = vector.extract_strided_slice %144 {offsets = [0, 0], sizes = [8, 32], strides = [1, 1]} : vector<8x64xf32> to vector<8x32xf32>
    %146 = vector.extract_strided_slice %144 {offsets = [0, 32], sizes = [8, 32], strides = [1, 1]} : vector<8x64xf32> to vector<8x32xf32>
    %147 = vector.extract_strided_slice %135 {offsets = [0, 64], sizes = [8, 32], strides = [1, 1]} : vector<8x96xf32> to vector<8x32xf32>
    %148 = vector.extract_strided_slice %136 {offsets = [0, 64], sizes = [8, 32], strides = [1, 1]} : vector<8x96xf32> to vector<8x32xf32>
    %149 = vector.broadcast %2 : vector<1x32xf32> to vector<8x32xf32>
    %150 = arith.addf %148, %149 : vector<8x32xf32>
    %151 = arith.mulf %145, %150 : vector<8x32xf32>
    %152 = arith.addf %147, %151 : vector<8x32xf32>
    %153 = math.tanh %152 : vector<8x32xf32>
    %cst_44 = arith.constant 1.000000e+00 : f32
    %154 = vector.broadcast %cst_44 : f32 to vector<8x32xf32>
    %155 = arith.subf %154, %146 : vector<8x32xf32>
    %156 = arith.mulf %155, %153 : vector<8x32xf32>
    %157 = arith.mulf %146, %133 : vector<8x32xf32>
    %158 = arith.addf %156, %157 : vector<8x32xf32>
    %c5 = arith.constant 5 : index
    %c0_45 = arith.constant 0 : index
    %c0_46 = arith.constant 0 : index
    %159 = vector.load %arg7[%c5, %c0_45, %c0_46] : memref<8x8x96xf32, #tpu.memory_space<vmem>>, vector<1x8x96xf32>
    %160 = vector.shape_cast %159 : vector<1x8x96xf32> to vector<8x96xf32>
    %cst_47 = arith.constant dense<0.000000e+00> : vector<8x96xf32>
    %161 = tpu.matmul %158, %32, %cst_47 {dimension_numbers = #tpu.dot_dimension_numbers<[1], [0], [0], [1], [0, 0, 1, 1], [], []>} : vector<8x32xf32>, vector<32x96xf32>, vector<8x96xf32> -> vector<8x96xf32>
    %162 = vector.extract_strided_slice %160 {offsets = [0, 0], sizes = [8, 64], strides = [1, 1]} : vector<8x96xf32> to vector<8x64xf32>
    %163 = vector.extract_strided_slice %161 {offsets = [0, 0], sizes = [8, 64], strides = [1, 1]} : vector<8x96xf32> to vector<8x64xf32>
    %164 = arith.addf %162, %163 : vector<8x64xf32>
    %165 = arith.negf %164 : vector<8x64xf32>
    %166 = math.exp %165 : vector<8x64xf32>
    %cst_48 = arith.constant 1.000000e+00 : f32
    %167 = vector.broadcast %cst_48 : f32 to vector<8x64xf32>
    %168 = arith.addf %167, %166 : vector<8x64xf32>
    %169 = arith.divf %167, %168 : vector<8x64xf32>
    %170 = vector.extract_strided_slice %169 {offsets = [0, 0], sizes = [8, 32], strides = [1, 1]} : vector<8x64xf32> to vector<8x32xf32>
    %171 = vector.extract_strided_slice %169 {offsets = [0, 32], sizes = [8, 32], strides = [1, 1]} : vector<8x64xf32> to vector<8x32xf32>
    %172 = vector.extract_strided_slice %160 {offsets = [0, 64], sizes = [8, 32], strides = [1, 1]} : vector<8x96xf32> to vector<8x32xf32>
    %173 = vector.extract_strided_slice %161 {offsets = [0, 64], sizes = [8, 32], strides = [1, 1]} : vector<8x96xf32> to vector<8x32xf32>
    %174 = vector.broadcast %2 : vector<1x32xf32> to vector<8x32xf32>
    %175 = arith.addf %173, %174 : vector<8x32xf32>
    %176 = arith.mulf %170, %175 : vector<8x32xf32>
    %177 = arith.addf %172, %176 : vector<8x32xf32>
    %178 = math.tanh %177 : vector<8x32xf32>
    %cst_49 = arith.constant 1.000000e+00 : f32
    %179 = vector.broadcast %cst_49 : f32 to vector<8x32xf32>
    %180 = arith.subf %179, %171 : vector<8x32xf32>
    %181 = arith.mulf %180, %178 : vector<8x32xf32>
    %182 = arith.mulf %171, %158 : vector<8x32xf32>
    %183 = arith.addf %181, %182 : vector<8x32xf32>
    %c6 = arith.constant 6 : index
    %c0_50 = arith.constant 0 : index
    %c0_51 = arith.constant 0 : index
    %184 = vector.load %arg7[%c6, %c0_50, %c0_51] : memref<8x8x96xf32, #tpu.memory_space<vmem>>, vector<1x8x96xf32>
    %185 = vector.shape_cast %184 : vector<1x8x96xf32> to vector<8x96xf32>
    %cst_52 = arith.constant dense<0.000000e+00> : vector<8x96xf32>
    %186 = tpu.matmul %183, %32, %cst_52 {dimension_numbers = #tpu.dot_dimension_numbers<[1], [0], [0], [1], [0, 0, 1, 1], [], []>} : vector<8x32xf32>, vector<32x96xf32>, vector<8x96xf32> -> vector<8x96xf32>
    %187 = vector.extract_strided_slice %185 {offsets = [0, 0], sizes = [8, 64], strides = [1, 1]} : vector<8x96xf32> to vector<8x64xf32>
    %188 = vector.extract_strided_slice %186 {offsets = [0, 0], sizes = [8, 64], strides = [1, 1]} : vector<8x96xf32> to vector<8x64xf32>
    %189 = arith.addf %187, %188 : vector<8x64xf32>
    %190 = arith.negf %189 : vector<8x64xf32>
    %191 = math.exp %190 : vector<8x64xf32>
    %cst_53 = arith.constant 1.000000e+00 : f32
    %192 = vector.broadcast %cst_53 : f32 to vector<8x64xf32>
    %193 = arith.addf %192, %191 : vector<8x64xf32>
    %194 = arith.divf %192, %193 : vector<8x64xf32>
    %195 = vector.extract_strided_slice %194 {offsets = [0, 0], sizes = [8, 32], strides = [1, 1]} : vector<8x64xf32> to vector<8x32xf32>
    %196 = vector.extract_strided_slice %194 {offsets = [0, 32], sizes = [8, 32], strides = [1, 1]} : vector<8x64xf32> to vector<8x32xf32>
    %197 = vector.extract_strided_slice %185 {offsets = [0, 64], sizes = [8, 32], strides = [1, 1]} : vector<8x96xf32> to vector<8x32xf32>
    %198 = vector.extract_strided_slice %186 {offsets = [0, 64], sizes = [8, 32], strides = [1, 1]} : vector<8x96xf32> to vector<8x32xf32>
    %199 = vector.broadcast %2 : vector<1x32xf32> to vector<8x32xf32>
    %200 = arith.addf %198, %199 : vector<8x32xf32>
    %201 = arith.mulf %195, %200 : vector<8x32xf32>
    %202 = arith.addf %197, %201 : vector<8x32xf32>
    %203 = math.tanh %202 : vector<8x32xf32>
    %cst_54 = arith.constant 1.000000e+00 : f32
    %204 = vector.broadcast %cst_54 : f32 to vector<8x32xf32>
    %205 = arith.subf %204, %196 : vector<8x32xf32>
    %206 = arith.mulf %205, %203 : vector<8x32xf32>
    %207 = arith.mulf %196, %183 : vector<8x32xf32>
    %208 = arith.addf %206, %207 : vector<8x32xf32>
    %c7 = arith.constant 7 : index
    %c0_55 = arith.constant 0 : index
    %c0_56 = arith.constant 0 : index
    %209 = vector.load %arg7[%c7, %c0_55, %c0_56] : memref<8x8x96xf32, #tpu.memory_space<vmem>>, vector<1x8x96xf32>
    %210 = vector.shape_cast %209 : vector<1x8x96xf32> to vector<8x96xf32>
    %cst_57 = arith.constant dense<0.000000e+00> : vector<8x96xf32>
    %211 = tpu.matmul %208, %32, %cst_57 {dimension_numbers = #tpu.dot_dimension_numbers<[1], [0], [0], [1], [0, 0, 1, 1], [], []>} : vector<8x32xf32>, vector<32x96xf32>, vector<8x96xf32> -> vector<8x96xf32>
    %212 = vector.extract_strided_slice %210 {offsets = [0, 0], sizes = [8, 64], strides = [1, 1]} : vector<8x96xf32> to vector<8x64xf32>
    %213 = vector.extract_strided_slice %211 {offsets = [0, 0], sizes = [8, 64], strides = [1, 1]} : vector<8x96xf32> to vector<8x64xf32>
    %214 = arith.addf %212, %213 : vector<8x64xf32>
    %215 = arith.negf %214 : vector<8x64xf32>
    %216 = math.exp %215 : vector<8x64xf32>
    %cst_58 = arith.constant 1.000000e+00 : f32
    %217 = vector.broadcast %cst_58 : f32 to vector<8x64xf32>
    %218 = arith.addf %217, %216 : vector<8x64xf32>
    %219 = arith.divf %217, %218 : vector<8x64xf32>
    %220 = vector.extract_strided_slice %219 {offsets = [0, 0], sizes = [8, 32], strides = [1, 1]} : vector<8x64xf32> to vector<8x32xf32>
    %221 = vector.extract_strided_slice %219 {offsets = [0, 32], sizes = [8, 32], strides = [1, 1]} : vector<8x64xf32> to vector<8x32xf32>
    %222 = vector.extract_strided_slice %210 {offsets = [0, 64], sizes = [8, 32], strides = [1, 1]} : vector<8x96xf32> to vector<8x32xf32>
    %223 = vector.extract_strided_slice %211 {offsets = [0, 64], sizes = [8, 32], strides = [1, 1]} : vector<8x96xf32> to vector<8x32xf32>
    %224 = vector.broadcast %2 : vector<1x32xf32> to vector<8x32xf32>
    %225 = arith.addf %223, %224 : vector<8x32xf32>
    %226 = arith.mulf %220, %225 : vector<8x32xf32>
    %227 = arith.addf %222, %226 : vector<8x32xf32>
    %228 = math.tanh %227 : vector<8x32xf32>
    %cst_59 = arith.constant 1.000000e+00 : f32
    %229 = vector.broadcast %cst_59 : f32 to vector<8x32xf32>
    %230 = arith.subf %229, %221 : vector<8x32xf32>
    %231 = arith.mulf %230, %228 : vector<8x32xf32>
    %232 = arith.mulf %221, %208 : vector<8x32xf32>
    %233 = arith.addf %231, %232 : vector<8x32xf32>
    %c0_60 = arith.constant 0 : index
    %c0_61 = arith.constant 0 : index
    %234 = vector.load %arg3[%c0_60, %c0_61] : memref<64x1xf32, #tpu.memory_space<vmem>>, vector<64x1xf32>
    %235 = vector.extract_strided_slice %234 {offsets = [0, 0], sizes = [32, 1], strides = [1, 1]} : vector<64x1xf32> to vector<32x1xf32>
    %cst_62 = arith.constant dense<0.000000e+00> : vector<8x1xf32>
    %236 = tpu.matmul %233, %235, %cst_62 {dimension_numbers = #tpu.dot_dimension_numbers<[1], [0], [0], [1], [0, 0, 1, 1], [], []>} : vector<8x32xf32>, vector<32x1xf32>, vector<8x1xf32> -> vector<8x1xf32>
    %237 = vector.extract_strided_slice %234 {offsets = [32, 0], sizes = [32, 1], strides = [1, 1]} : vector<64x1xf32> to vector<32x1xf32>
    %cst_63 = arith.constant dense<0.000000e+00> : vector<8x1xf32>
    %238 = tpu.matmul %31, %237, %cst_63 {dimension_numbers = #tpu.dot_dimension_numbers<[1], [0], [0], [1], [0, 0, 1, 1], [], []>} : vector<8x32xf32>, vector<32x1xf32>, vector<8x1xf32> -> vector<8x1xf32>
    %239 = arith.addf %236, %238 : vector<8x1xf32>
    %c0_64 = arith.constant 0 : index
    %c0_65 = arith.constant 0 : index
    %240 = vector.load %arg5[%c0_64, %c0_65] : memref<1x1xf32, #tpu.memory_space<vmem>>, vector<1x1xf32>
    %241 = vector.broadcast %240 : vector<1x1xf32> to vector<8x1xf32>
    %242 = arith.addf %239, %241 : vector<8x1xf32>
    %243 = vector.shape_cast %242 : vector<8x1xf32> to vector<1x8xf32>
    %c0_66 = arith.constant 0 : index
    %c0_67 = arith.constant 0 : index
    %244 = vector.load %arg6[%c0_66, %c0_67] : memref<1x8xf32, #tpu.memory_space<vmem>>, vector<1x8xf32>
    tpu.vector_store %arg6[%c0_66, %c0_67], %243 {strides = array<i32>} : memref<1x8xf32, #tpu.memory_space<vmem>>, vector<1x8xf32>,
    return
  }
}

</mosaic_0001>

<bundles_post_ra>
// kernel: tpu_custom_call.1
= control target key start
LH: loop header
LB: loop body
LE: loop exit
PB: predicated region body
PF: predicated region fallthrough
CT: control target
= control target key end

     0   :  { %s1893_s0 = inlined_call_operand.vmem [shape: f32[8,8,4], index: 0, kind: input, shape index: {}]   ;;  %s1894_s1 = inlined_call_operand.vmem [shape: f32[4,192], index: 1, kind: input, shape index: {}]   ;;  %s1895_s2 = inlined_call_operand.vmem [shape: f32[32,96], index: 2, kind: input, shape index: {}]   ;;  %s1896_s3 = inlined_call_operand.vmem [shape: f32[64,1], index: 3, kind: input, shape index: {}]   ;;  %s1897_s4 = inlined_call_operand.vmem [shape: f32[2,128], index: 4, kind: input, shape index: {}]   ;;  %s1898_s5 = inlined_call_operand.<no memory space> [shape: f32[1,1], index: 5, kind: input, shape index: {}]   ;;  %s1899_s6 = inlined_call_operand.hbm [shape: f32[1,8], index: 6, kind: output, shape index: {}]  }
   0x1   :  { %v11_v0 = vstv %s1898_s5 }
   0x2   :  { %12 = vst [vmem:[#allocation3] sm:$0x1] %v11_v0 }
   0x3   :  { %v36_v1 = vld [vmem:[%s1894_s1] sm:$0xff]  ;;  %vm64_vm0 = vcmask 1043456   ;;  %v232_v3 = vld [vmem:[%s1895_s2 + $0x8] sm:$0xff]  ;;  %v1603_v4 = vmov 0.0|0.0   ;;  %v1604_v7 = vmov 0.0   ;;  %v233_v9 = vld [vmem:[%s1895_s2 + $0x10] sm:$0xff] }
   0x4   :  { %v231_v2 = vld [vmem:[%s1895_s2] sm:$0xff]  ;;  %1452 = vmatprep.subr.bf16.mxu1 %v1603_v4  ;;  %v38_v5 = vcombine.high %v36_v1, %v36_v1  ;;  %133 = vmatprep.mubr.f32.mxu0 %v1604_v7  ;;  %v234_v10 = vld [vmem:[%s1895_s2 + $0x18] sm:$0xff]  ;;  %vm39_vm1 = vcmask 31744   ;;  %vm1605_vm2 = vmmov 0  }
   0x5   :  { %v1658_v6 = vpack.c.bf16 %v232_v3, %v231_v2  ;;  %v28_v8 = vld [vmem:[%s1893_s0] sm:$0xff]  ;;  %1350 = vmatprep.mubr.msk.f32.mxu1 %vm1605_vm2, %v1604_v7 }
   0x6   :  { %v1675_v11 = vld [vmem:[%s1897_s4] ss:$0 sm:$0xff] }
   0x7   :  { %13 = vsyncpa [#allocation5], 0  ;;  %1260 = vmatprep.subr.msk.mxu0 %vm64_vm0, %v38_v5  ;;  %1454 = vmatpush3.bf16.msra.mxu1 %v1658_v6  ;;  %v1679_v12 = vpack.c.bf16 %v234_v10, %v233_v9  ;;  %s1606_s2 = smov 96   ;;  %vm187_vm3 = vcmask 785408   ;;  %s1607_s11 = smov 64   ;;  %v29_v30 = vld [vmem:[%s1893_s0 + $0x8] sm:$0xff] }
   0x8   :  { %1261 = vmatpush1.msk.msra.mxu0 %vm64_vm0, %v36_v1  ;;  %1455 = vmatprep.subr.bf16.mxu1 %v1603_v4  ;;  %vm236_vm4 = vcmask 261120   ;;  %v30_v54 = vld [vmem:[%s1893_s0 + $0x10] sm:$0xff]  ;;  %vm1244_vm5 = vcmask 57344  }
   0x9   :  { %1262 = vmatmul.mubr.msk.f32.vlgmr.msra.gmra.mrb[0].mxu0 %vm39_vm1, %v28_v8  ;;  %318 = vrot.lane.b32.xlu0 %v1675_v11, %s1606_s2 }
   0xa   :  { %138 = vmatprep.mubr.f32.mxu0 %v1604_v7  ;;  %1476 = vmatprep.subr.bf16.mxu0 %v1603_v4 }
   0xb   :  { %1457 = vmatpush3.bf16.msra.mxu1 %v1679_v12  ;;  %1478 = vmatpush3.bf16.msra.mxu0 %v1658_v6 }
   0xc   :  { %1458 = vmatprep.subr.bf16.mxu1 %v1603_v4  ;;  %1479 = vmatprep.subr.bf16.mxu0 %v1603_v4 }
   0xd   :  { %1263 = vmatmul.mubr.msk.f32.gmra.mrb[2].mxu0 %vm39_vm1, %v29_v30 }
   0xe   :  { %1351 = vmatmul.mubr.f32.vlgmr.msra.gmra.mrb[0].mxu1 %v1604_v7  ;;  %143 = vmatprep.mubr.f32.mxu0 %v1604_v7 }
   0xf   :  { %1460 = vmatpush3.bf16.msra.mxu1 %v1658_v6  ;;  %1361 = vmatprep.mubr.msk.f32.mxu1 %vm1605_vm2, %v1604_v7 }
  0x10   :  { %1461 = vmatprep.subr.bf16.mxu1 %v1603_v4  ;;  %1481 = vmatpush3.bf16.msra.mxu0 %v1679_v12 }
  0x11   :  { %1488 = vmatprep.subr.bf16.mxu0 %v1603_v4  ;;  %1264 = vmatmul.mubr.msk.f32.gmra.mrb[4].mxu0 %vm39_vm1, %v30_v54 }
  0x12   :  { %148 = vmatprep.mubr.f32.mxu0 %v1604_v7 }
  0x13   :  { %1463 = vmatpush3.bf16.msra.mxu1 %v1679_v12 }
  0x14   :  { %1464 = vmatprep.subr.bf16.mxu1 %v1603_v4 }
  0x7b   :  { %v1703_v16 = vpop.permute.xlu0 %318 }
  0xdc   :  { %v135_v13 = vpop.f32.mrb[0].mxu0 }
  0xdd   :  { %v179_v14 = vadd.f32 %v1675_v11, %v135_v13  ;;  %v137_v15 = vpop.f32.mrb[1].mxu0 }
  0xdf   :  { %188 = vst.msk [vmem:[#allocation2] sm:$0xff] %vm187_vm3, %v179_v14 }
  0xe0   :  { %v140_v37 = vpop.f32.mrb[2].mxu0 }
  0xe1   :  { %v306_v17 = vpop.f32.mrb[0].mxu1  ;;  %v180_v38 = vadd.f32 %v1675_v11, %v140_v37  ;;  %v142_v39 = vpop.f32.mrb[3].mxu0 }
  0xe2   :  { %v1352_v18 = vpop.f32.mrb[1].mxu1  ;;  %v321_v19 = vadd.f32 %v1703_v16, %v306_v17 }
  0xe3   :  { %189 = vst.msk [vmem:[#allocation2 + $0x8] sm:$0xff] %vm187_vm3, %v180_v38 }
  0xe4   :  { %323 = vrot.lane.b32.xlu0 %v321_v19, %s1607_s11  ;;  %v145_v61 = vpop.f32.mrb[4].mxu0 }
  0xe5   :  { %v181_v62 = vadd.f32 %v1675_v11, %v145_v61  ;;  %v147_v63 = vpop.f32.mrb[5].mxu0 }
  0xe6   :  { %v235_v20 = vld [vmem:[#allocation2] sm:$0xff] }
  0xe7   :  { %v310_v21 = vadd.f32 %v306_v17, %v235_v20  ;;  %190 = vst.msk [vmem:[#allocation2 + $0x10] sm:$0xff] %vm187_vm3, %v181_v62 }
  0xe9   :  { %v1274_v22 = vmul.f32 -1.442695, %v310_v21 }
  0xea   :  { %v342_v44 = vld [vmem:[#allocation2 + $0x8] sm:$0xff] }
  0xeb   :  { %1521 = vpow2.f32 %v1274_v22 }
  0xee   :  { %v446_v5 = vld [vmem:[#allocation2 + $0x10] sm:$0xff] }
  0xf5   :  { %v1522_v23 = vpop.eup %1521 }
  0xf6   :  { %v314_v24 = vadd.f32 1.0, %v1522_v23 }
  0xf8   :  { %1523 = vrcp.f32 %v314_v24 }
 0x102   :  { %v1524_v25 = vpop.eup %1523 }
 0x103   :  { %v333_v32 = vsub.f32 1.0, %v1524_v25  ;;  %v339_v34 = vmul.f32 0.0, %v1524_v25 }
 0x156   :  { %v324_v26 = vpop.permute.xlu0 %323 }
 0x157   :  { %v326_v27 = vmul.f32 %v1524_v25, %v324_v26 }
 0x159   :  { %328 = vrot.lane.b32.xlu1 %v326_v27, %s1607_s11 }
 0x1cb   :  { %v329_v28 = vpop.permute.xlu1 %328 }
 0x1cc   :  { %v331_v29 = vadd.f32 %v329_v28, %v235_v20  ;;  %v31_v20 = vld [vmem:[%s1893_s0 + $0x18] sm:$0xff] }
 0x1cd   :  { %1265 = vmatmul.mubr.msk.f32.gmra.mrb[6].mxu0 %vm39_vm1, %v31_v20 }
 0x1ce   :  { %1525 = vtanh.f32 %v331_v29  ;;  %153 = vmatprep.mubr.f32.mxu0 %v1604_v7 }
 0x1d8   :  { %v1526_v31 = vpop.eup %1525 }
 0x1d9   :  { %335 = vrot.lane.b32.xlu1 %v1526_v31, %s1606_s2 }
 0x24b   :  { %v336_v33 = vpop.permute.xlu1 %335 }
 0x24c   :  { %v338_v35 = vmul.f32 %v336_v33, %v333_v32 }
 0x24e   :  { %v340_v36 = vadd.f32 %v339_v34, %v338_v35 }
 0x250   :  { %344 = vrot.lane.b32.xlu0 %v340_v36, %s1606_s2 }
 0x2a0   :  { %v150_v27 = vpop.f32.mrb[6].mxu0 }
 0x2a1   :  { %v182_v28 = vadd.f32 %v1675_v11, %v150_v27  ;;  %v152_v29 = vpop.f32.mrb[7].mxu0 }
 0x2a3   :  { %191 = vst.msk [vmem:[#allocation2 + $0x18] sm:$0xff] %vm187_vm3, %v182_v28 }
 0x2aa   :  { %v550_v34 = vld [vmem:[#allocation2 + $0x18] sm:$0xff] }
 0x2c2   :  { %v345_v40 = vpop.permute.xlu0 %344 }
 0x2c3   :  { %1362 = vmatmul.mubr.msk.f32.vlgmr.msra.gmra.mrb[2].mxu1 %vm236_vm4, %v345_v40 }
 0x2c4   :  { %1466 = vmatpush3.bf16.msra.mxu1 %v1658_v6  ;;  %1372 = vmatprep.mubr.msk.f32.mxu1 %vm1605_vm2, %v1604_v7 }
 0x2c5   :  { %1467 = vmatprep.subr.bf16.mxu1 %v1603_v4 }
 0x2c8   :  { %1469 = vmatpush3.bf16.msra.mxu1 %v1679_v12 }
 0x2c9   :  { %1470 = vmatprep.subr.bf16.mxu1 %v1603_v4 }
 0x396   :  { %v414_v41 = vpop.f32.mrb[2].mxu1 }
 0x397   :  { %v425_v42 = vadd.f32 %v414_v41, %v1703_v16  ;;  %v1363_v43 = vpop.f32.mrb[3].mxu1  ;;  %v418_v45 = vadd.f32 %v414_v41, %v342_v44 }
 0x399   :  { %427 = vrot.lane.b32.xlu1 %v425_v42, %s1607_s11  ;;  %v1276_v46 = vmul.f32 -1.442695, %v418_v45  ;;  %v33_v45 = vld [vmem:[%s1893_s0 + $0x28] sm:$0xff] }
 0x39b   :  { %1527 = vpow2.f32 %v1276_v46  ;;  %v34_v46 = vld [vmem:[%s1893_s0 + $0x30] sm:$0xff] }
 0x3a5   :  { %v1528_v47 = vpop.eup %1527 }
 0x3a6   :  { %v422_v48 = vadd.f32 1.0, %v1528_v47 }
 0x3a8   :  { %1529 = vrcp.f32 %v422_v48  ;;  %v35_v48 = vld [vmem:[%s1893_s0 + $0x38] sm:$0xff] }
 0x3b2   :  { %v1530_v49 = vpop.eup %1529 }
 0x3b3   :  { %v437_v56 = vsub.f32 1.0, %v1530_v49  ;;  %v443_v58 = vmul.f32 %v1530_v49, %v340_v36 }
 0x40b   :  { %v428_v50 = vpop.permute.xlu1 %427 }
 0x40c   :  { %v430_v51 = vmul.f32 %v1530_v49, %v428_v50 }
 0x40e   :  { %432 = vrot.lane.b32.xlu0 %v430_v51, %s1607_s11 }
 0x480   :  { %v433_v52 = vpop.permute.xlu0 %432 }
 0x481   :  { %v435_v53 = vadd.f32 %v433_v52, %v342_v44  ;;  %v32_v44 = vld [vmem:[%s1893_s0 + $0x20] sm:$0xff] }
 0x482   :  { %1266 = vmatmul.mubr.msk.f32.gmra.mrb[8].mxu0 %vm39_vm1, %v32_v44 }
 0x483   :  { %1531 = vtanh.f32 %v435_v53  ;;  %158 = vmatprep.mubr.f32.mxu0 %v1604_v7 }
 0x486   :  { %1267 = vmatmul.mubr.msk.f32.gmra.mrb[10].mxu0 %vm39_vm1, %v33_v45 }
 0x487   :  { %163 = vmatprep.mubr.f32.mxu0 %v1604_v7 }
 0x48a   :  { %1268 = vmatmul.mubr.msk.f32.gmra.mrb[12].mxu0 %vm39_vm1, %v34_v46 }
 0x48b   :  { %168 = vmatprep.mubr.f32.mxu0 %v1604_v7 }
 0x48d   :  { %v1532_v55 = vpop.eup %1531 }
 0x48e   :  { %439 = vrot.lane.b32.xlu1 %v1532_v55, %s1606_s2  ;;  %1269 = vmatmul.mubr.msk.f32.gmra.mrb[14].mxu0 %vm39_vm1, %v35_v48 }
 0x48f   :  { %1394 = vmatprep.mubr.msk.f32.mxu0 %vm1605_vm2, %v1604_v7 }
 0x500   :  { %v440_v57 = vpop.permute.xlu1 %439 }
 0x501   :  { %v442_v59 = vmul.f32 %v440_v57, %v437_v56 }
 0x503   :  { %v444_v60 = vadd.f32 %v443_v58, %v442_v59 }
 0x505   :  { %448 = vrot.lane.b32.xlu0 %v444_v60, %s1606_s2 }
 0x555   :  { %v155_v54 = vpop.f32.mrb[8].mxu0 }
 0x556   :  { %v183_v55 = vadd.f32 %v1675_v11, %v155_v54  ;;  %v157_v56 = vpop.f32.mrb[9].mxu0 }
 0x558   :  { %192 = vst.msk [vmem:[#allocation2 + $0x20] sm:$0xff] %vm187_vm3, %v183_v55 }
 0x559   :  { %v160_v57 = vpop.f32.mrb[10].mxu0 }
 0x55a   :  { %v184_v58 = vadd.f32 %v1675_v11, %v160_v57  ;;  %v162_v59 = vpop.f32.mrb[11].mxu0 }
 0x55c   :  { %193 = vst.msk [vmem:[#allocation2 + $0x28] sm:$0xff] %vm187_vm3, %v184_v58 }
 0x577   :  { %v449_v0 = vpop.permute.xlu0 %448 }
 0x578   :  { %1373 = vmatmul.mubr.msk.f32.vlgmr.msra.gmra.mrb[4].mxu1 %vm236_vm4, %v449_v0 }
 0x579   :  { %1472 = vmatpush3.bf16.msra.mxu1 %v1658_v6  ;;  %1383 = vmatprep.mubr.msk.f32.mxu1 %vm1605_vm2, %v1604_v7 }
 0x57a   :  { %1473 = vmatprep.subr.bf16.mxu1 %v1603_v4 }
 0x57d   :  { %1475 = vmatpush3.bf16.msra.mxu1 %v1679_v12 }
 0x57e   :  { %1482 = vmatprep.subr.bf16.mxu1 %v1603_v4 }
 0x64b   :  { %v518_v1 = vpop.f32.mrb[4].mxu1 }
 0x64c   :  { %v529_v2 = vadd.f32 %v518_v1, %v1703_v16  ;;  %v1374_v3 = vpop.f32.mrb[5].mxu1  ;;  %v522_v8 = vadd.f32 %v518_v1, %v446_v5 }
 0x64e   :  { %531 = vrot.lane.b32.xlu1 %v529_v2, %s1607_s11  ;;  %v1278_v9 = vmul.f32 -1.442695, %v522_v8  ;;  %v654_v8 = vld [vmem:[#allocation2 + $0x20] sm:$0xff] }
 0x650   :  { %1533 = vpow2.f32 %v1278_v9 }
 0x65a   :  { %v1534_v10 = vpop.eup %1533 }
 0x65b   :  { %v526_v13 = vadd.f32 1.0, %v1534_v10 }
 0x65d   :  { %1535 = vrcp.f32 %v526_v13 }
 0x667   :  { %v1536_v14 = vpop.eup %1535 }
 0x668   :  { %v541_v22 = vsub.f32 1.0, %v1536_v14  ;;  %v547_v24 = vmul.f32 %v1536_v14, %v444_v60  ;;  %v165_v60 = vpop.f32.mrb[12].mxu0 }
 0x669   :  { %v185_v61 = vadd.f32 %v1675_v11, %v165_v60  ;;  %v167_v62 = vpop.f32.mrb[13].mxu0 }
 0x66a   :  { %v1794_v63 = vpop.f32.mrb[14].mxu0 }
 0x66b   :  { %194 = vst.msk [vmem:[#allocation2 + $0x30] sm:$0xff] %vm187_vm3, %v185_v61  ;;  %v186_v0 = vadd.f32 %v1675_v11, %v1794_v63  ;;  %v1798_v1 = vpop.f32.mrb[15].mxu0 }
 0x66d   :  { %195 = vst.msk [vmem:[#allocation2 + $0x38] sm:$0xff] %vm187_vm3, %v186_v0 }
 0x6c0   :  { %v532_v15 = vpop.permute.xlu1 %531 }
 0x6c1   :  { %v534_v17 = vmul.f32 %v1536_v14, %v532_v15 }
 0x6c3   :  { %536 = vrot.lane.b32.xlu0 %v534_v17, %s1607_s11 }
 0x735   :  { %v537_v18 = vpop.permute.xlu0 %536 }
 0x736   :  { %v539_v19 = vadd.f32 %v537_v18, %v446_v5 }
 0x738   :  { %1537 = vtanh.f32 %v539_v19 }
 0x742   :  { %v1538_v21 = vpop.eup %1537 }
 0x743   :  { %543 = vrot.lane.b32.xlu1 %v1538_v21, %s1606_s2 }
 0x7b5   :  { %v544_v23 = vpop.permute.xlu1 %543 }
 0x7b6   :  { %v546_v25 = vmul.f32 %v544_v23, %v541_v22 }
 0x7b8   :  { %v548_v26 = vadd.f32 %v547_v24, %v546_v25 }
 0x7ba   :  { %552 = vrot.lane.b32.xlu0 %v548_v26, %s1606_s2 }
 0x82c   :  { %v553_v30 = vpop.permute.xlu0 %552 }
 0x82d   :  { %1384 = vmatmul.mubr.msk.f32.vlgmr.msra.gmra.mrb[6].mxu1 %vm236_vm4, %v553_v30 }
 0x82e   :  { %1484 = vmatpush3.bf16.msra.mxu1 %v1658_v6  ;;  %1405 = vmatprep.mubr.msk.f32.mxu1 %vm1605_vm2, %v1604_v7 }
 0x82f   :  { %1485 = vmatprep.subr.bf16.mxu1 %v1603_v4 }
 0x832   :  { %1487 = vmatpush3.bf16.msra.mxu1 %v1679_v12 }
 0x833   :  { %1494 = vmatprep.subr.bf16.mxu1 %v1603_v4 }
 0x900   :  { %v622_v31 = vpop.f32.mrb[6].mxu1 }
 0x901   :  { %v633_v32 = vadd.f32 %v622_v31, %v1703_v16  ;;  %v1385_v33 = vpop.f32.mrb[7].mxu1  ;;  %v626_v35 = vadd.f32 %v622_v31, %v550_v34  ;;  %v758_v31 = vld [vmem:[#allocation2 + $0x28] sm:$0xff] }
 0x903   :  { %635 = vrot.lane.b32.xlu1 %v633_v32, %s1607_s11  ;;  %v1280_v36 = vmul.f32 -1.442695, %v626_v35 }
 0x905   :  { %1539 = vpow2.f32 %v1280_v36 }
 0x90f   :  { %v1540_v37 = vpop.eup %1539 }
 0x910   :  { %v630_v38 = vadd.f32 1.0, %v1540_v37 }
 0x912   :  { %1541 = vrcp.f32 %v630_v38 }
 0x91c   :  { %v1542_v39 = vpop.eup %1541 }
 0x91d   :  { %v645_v49 = vsub.f32 1.0, %v1542_v39  ;;  %v651_v51 = vmul.f32 %v1542_v39, %v548_v26 }
 0x975   :  { %v636_v40 = vpop.permute.xlu1 %635 }
 0x976   :  { %v638_v41 = vmul.f32 %v1542_v39, %v636_v40 }
 0x978   :  { %640 = vrot.lane.b32.xlu0 %v638_v41, %s1607_s11 }
 0x9ea   :  { %v641_v42 = vpop.permute.xlu0 %640 }
 0x9eb   :  { %v643_v43 = vadd.f32 %v641_v42, %v550_v34 }
 0x9ed   :  { %1543 = vtanh.f32 %v643_v43 }
 0x9f7   :  { %v1544_v47 = vpop.eup %1543 }
 0x9f8   :  { %647 = vrot.lane.b32.xlu1 %v1544_v47, %s1606_s2 }
 0xa6a   :  { %v648_v50 = vpop.permute.xlu1 %647 }
 0xa6b   :  { %v650_v52 = vmul.f32 %v648_v50, %v645_v49  ;;  %v862_v49 = vld [vmem:[#allocation2 + $0x30] sm:$0xff] }
 0xa6d   :  { %v652_v53 = vadd.f32 %v651_v51, %v650_v52 }
 0xa6f   :  { %656 = vrot.lane.b32.xlu0 %v652_v53, %s1606_s2 }
 0xae1   :  { %v657_v2 = vpop.permute.xlu0 %656 }
 0xae2   :  { %1395 = vmatmul.mubr.msk.f32.vlgmr.msra.gmra.mrb[16].mxu0 %vm236_vm4, %v657_v2 }
 0xae3   :  { %1490 = vmatpush3.bf16.msra.mxu0 %v1658_v6  ;;  %1416 = vmatprep.mubr.msk.f32.mxu0 %vm1605_vm2, %v1604_v7 }
 0xae4   :  { %1491 = vmatprep.subr.bf16.mxu0 %v1603_v4 }
 0xae7   :  { %1493 = vmatpush3.bf16.msra.mxu0 %v1679_v12 }
 0xae8   :  { %1500 = vmatprep.subr.bf16.mxu0 %v1603_v4 }
 0xbb5   :  { %v726_v3 = vpop.f32.mrb[16].mxu0 }
 0xbb6   :  { %v737_v11 = vadd.f32 %v726_v3, %v1703_v16  ;;  %v1396_v5 = vpop.f32.mrb[17].mxu0  ;;  %v730_v9 = vadd.f32 %v726_v3, %v654_v8  ;;  %v1271_v3 = vld [vmem:[%s1897_s4 + $0x1] ss:$0 sm:$0xff] }
 0xbb8   :  { %739 = vrot.lane.b32.xlu1 %v737_v11, %s1607_s11  ;;  %v1282_v10 = vmul.f32 -1.442695, %v730_v9 }
 0xbba   :  { %1545 = vpow2.f32 %v1282_v10 }
 0xbc4   :  { %v1546_v13 = vpop.eup %1545 }
 0xbc5   :  { %v734_v14 = vadd.f32 1.0, %v1546_v13 }
 0xbc7   :  { %1547 = vrcp.f32 %v734_v14 }
 0xbd1   :  { %v1548_v15 = vpop.eup %1547 }
 0xbd2   :  { %v749_v22 = vsub.f32 1.0, %v1548_v15  ;;  %v755_v24 = vmul.f32 %v1548_v15, %v652_v53 }
 0xc2a   :  { %v740_v17 = vpop.permute.xlu1 %739 }
 0xc2b   :  { %v742_v18 = vmul.f32 %v1548_v15, %v740_v17  ;;  %v1073_v17 = vld [vmem:[%s1896_s3 + $0x20] sm:$0xff] }
 0xc2d   :  { %744 = vrot.lane.b32.xlu0 %v742_v18, %s1607_s11 }
 0xc9f   :  { %v745_v19 = vpop.permute.xlu0 %744 }
 0xca0   :  { %v747_v20 = vadd.f32 %v745_v19, %v654_v8  ;;  %v1076_v19 = vld [vmem:[%s1896_s3 + $0x38] sm:$0xff] }
 0xca2   :  { %1549 = vtanh.f32 %v747_v20 }
 0xcac   :  { %v1550_v21 = vpop.eup %1549 }
 0xcad   :  { %751 = vrot.lane.b32.xlu1 %v1550_v21, %s1606_s2 }
 0xd1f   :  { %v752_v23 = vpop.permute.xlu1 %751 }
 0xd20   :  { %v754_v25 = vmul.f32 %v752_v23, %v749_v22 }
 0xd22   :  { %v756_v26 = vadd.f32 %v755_v24, %v754_v25 }
 0xd24   :  { %760 = vrot.lane.b32.xlu0 %v756_v26, %s1606_s2 }
 0xd96   :  { %v761_v27 = vpop.permute.xlu0 %760 }
 0xd97   :  { %1406 = vmatmul.mubr.msk.f32.vlgmr.msra.gmra.mrb[8].mxu1 %vm236_vm4, %v761_v27 }
 0xd98   :  { %1496 = vmatpush3.bf16.msra.mxu1 %v1658_v6  ;;  %1427 = vmatprep.mubr.msk.f32.mxu1 %vm1605_vm2, %v1604_v7 }
 0xd99   :  { %1497 = vmatprep.subr.bf16.mxu1 %v1603_v4 }
 0xd9c   :  { %1499 = vmatpush3.bf16.msra.mxu1 %v1679_v12 }
 0xd9d   :  { %1506 = vmatprep.subr.bf16.mxu1 %v1603_v4 }
 0xe6a   :  { %v830_v28 = vpop.f32.mrb[8].mxu1 }
 0xe6b   :  { %v841_v29 = vadd.f32 %v830_v28, %v1703_v16  ;;  %v1407_v30 = vpop.f32.mrb[9].mxu1  ;;  %v834_v32 = vadd.f32 %v830_v28, %v758_v31 }
 0xe6d   :  { %843 = vrot.lane.b32.xlu1 %v841_v29, %s1607_s11  ;;  %v1284_v33 = vmul.f32 -1.442695, %v834_v32 }
 0xe6f   :  { %1551 = vpow2.f32 %v1284_v33 }
 0xe79   :  { %v1552_v6 = vpop.eup %1551 }
 0xe7a   :  { %v838_v34 = vadd.f32 1.0, %v1552_v6  ;;  %v966_v6 = vld [vmem:[#allocation2 + $0x38] sm:$0xff] }
 0xe7c   :  { %1553 = vrcp.f32 %v838_v34 }
 0xe86   :  { %v1554_v35 = vpop.eup %1553 }
 0xe87   :  { %v853_v40 = vsub.f32 1.0, %v1554_v35  ;;  %v859_v42 = vmul.f32 %v1554_v35, %v756_v26 }
 0xedf   :  { %v844_v36 = vpop.permute.xlu1 %843 }
 0xee0   :  { %v846_v37 = vmul.f32 %v1554_v35, %v844_v36 }
 0xee2   :  { %848 = vrot.lane.b32.xlu0 %v846_v37, %s1607_s11 }
 0xf54   :  { %v849_v12 = vpop.permute.xlu0 %848 }
 0xf55   :  { %v851_v38 = vadd.f32 %v849_v12, %v758_v31 }
 0xf57   :  { %1555 = vtanh.f32 %v851_v38 }
 0xf61   :  { %v1556_v39 = vpop.eup %1555 }
 0xf62   :  { %855 = vrot.lane.b32.xlu1 %v1556_v39, %s1606_s2 }
 0xfd4   :  { %v856_v41 = vpop.permute.xlu1 %855 }
 0xfd5   :  { %v858_v43 = vmul.f32 %v856_v41, %v853_v40  ;;  %v1069_v41 = vld [vmem:[%s1896_s3] sm:$0xff] }
 0xfd7   :  { %v860_v44 = vadd.f32 %v859_v42, %v858_v43  ;;  %v1070_v42 = vld [vmem:[%s1896_s3 + $0x8] sm:$0xff]  ;;  %v1071_v43 = vld [vmem:[%s1896_s3 + $0x10] sm:$0xff] }
 0xfd9   :  { %864 = vrot.lane.b32.xlu0 %v860_v44, %s1606_s2 }
0x104b   :  { %v865_v45 = vpop.permute.xlu0 %864 }
0x104c   :  { %1417 = vmatmul.mubr.msk.f32.vlgmr.msra.gmra.mrb[18].mxu0 %vm236_vm4, %v865_v45  ;;  %v1072_v45 = vld [vmem:[%s1896_s3 + $0x18] sm:$0xff] }
0x104d   :  { %1438 = vmatprep.mubr.msk.f32.mxu0 %vm1605_vm2, %v1604_v7 }
0x111f   :  { %v934_v46 = vpop.f32.mrb[18].mxu0 }
0x1120   :  { %v945_v47 = vadd.f32 %v934_v46, %v1703_v16  ;;  %v1418_v48 = vpop.f32.mrb[19].mxu0  ;;  %v938_v50 = vadd.f32 %v934_v46, %v862_v49  ;;  %v1510_v46 = vpack.c.bf16 %v1072_v45, %v1071_v43 }
0x1122   :  { %947 = vrot.lane.b32.xlu1 %v945_v47, %s1607_s11  ;;  %v1286_v51 = vmul.f32 -1.442695, %v938_v50 }
0x1124   :  { %1557 = vpow2.f32 %v1286_v51 }
0x112e   :  { %v1558_v52 = vpop.eup %1557 }
0x112f   :  { %v942_v53 = vadd.f32 1.0, %v1558_v52 }
0x1131   :  { %1559 = vrcp.f32 %v942_v53 }
0x113b   :  { %v1560_v54 = vpop.eup %1559 }
0x113c   :  { %v957_v60 = vsub.f32 1.0, %v1560_v54  ;;  %v963_v62 = vmul.f32 %v1560_v54, %v860_v44  ;;  %v1507_v44 = vpack.c.bf16 %v1070_v42, %v1069_v41 }
0x1194   :  { %v948_v55 = vpop.permute.xlu1 %947 }
0x1195   :  { %v950_v56 = vmul.f32 %v1560_v54, %v948_v55 }
0x1197   :  { %952 = vrot.lane.b32.xlu0 %v950_v56, %s1607_s11  ;;  %v1608_v56 = vmov 0  }
0x1198   :  { %1519 = vset.pattern.permute.xlu0 %v1608_v56 }
0x1209   :  { %v953_v57 = vpop.permute.xlu0 %952 }
0x120a   :  { %v955_v58 = vadd.f32 %v953_v57, %v862_v49  ;;  %v1291_v57 = vld [vmem:[#allocation3] ss:$0 sm:$0xff] }
0x120c   :  { %1561 = vtanh.f32 %v955_v58 }
0x1216   :  { %v1562_v59 = vpop.eup %1561 }
0x1217   :  { %959 = vrot.lane.b32.xlu1 %v1562_v59, %s1606_s2 }
0x1289   :  { %v960_v61 = vpop.permute.xlu1 %959 }
0x128a   :  { %v962_v0 = vmul.f32 %v960_v61, %v957_v60  ;;  %v1237_v61 = vlaneseq }
0x128c   :  { %v1832_v2 = vadd.f32 %v963_v62, %v962_v0  ;;  %v1238_v62 = vand.u32 127, %v1237_v61  ;;  %v1240_v0 = vshrl.u32 %v1237_v61, 7 }
0x128e   :  { %968 = vrot.lane.b32.xlu0 %v1832_v2, %s1606_s2 }
0x1292   :  { %201 = vrot.lane.b32.xlu0 %v1271_v3, %s1606_s2 }
0x1300   :  { %v969_v11 = vpop.permute.xlu0 %968 }
0x1301   :  { %1428 = vmatmul.mubr.msk.f32.vlgmr.msra.gmra.mrb[10].mxu1 %vm236_vm4, %v969_v11 }
0x1302   :  { %1449 = vmatprep.mubr.msk.f32.mxu1 %vm1605_vm2, %v1604_v7  ;;  %v1074_v7 = vld [vmem:[%s1896_s3 + $0x28] sm:$0xff]  ;;  %1508 = vmatpush3.bf16.msra.mxu1 %v1507_v44 }
0x1303   :  { %v1501_v18 = vpack.c.bf16 %v1074_v7, %v1073_v17  ;;  %1509 = vmatprep.subr.bf16.mxu1 %v1603_v4 }
0x1304   :  { %v202_v5 = vpop.permute.xlu0 %201 }
0x1305   :  { %v204_v8 = vadd.f32 %v202_v5, %v1794_v63  ;;  %v1075_v63 = vld [vmem:[%s1896_s3 + $0x30] sm:$0xff]  ;;  %1502 = vmatpush3.bf16.msra.mxu0 %v1501_v18  ;;  %v205_v21 = vadd.f32 %v202_v5, %v1798_v1  ;;  %s1609_s3 = smov [#allocation4]  }
0x1306   :  { %v1504_v20 = vpack.c.bf16 %v1076_v19, %v1075_v63  ;;  %1503 = vmatprep.subr.bf16.mxu0 %v1603_v4  ;;  %1511 = vmatpush3.bf16.msra.mxu1 %v1510_v46 }
0x1307   :  { %v1272_v9 = vmul.f32 -1.442695, %v204_v8  ;;  %v1273_v28 = vmul.f32 -1.442695, %v205_v21 }
0x1309   :  { %1563 = vpow2.f32 %v1272_v9  ;;  %1505 = vmatpush3.bf16.msra.mxu0 %v1504_v20 }
0x1313   :  { %v1564_v10 = vpop.eup %1563 }
0x1314   :  { %v212_v13 = vadd.f32 1.0, %v1564_v10 }
0x1316   :  { %1565 = vrcp.f32 %v212_v13 }
0x1320   :  { %v1566_v14 = vpop.eup %1565 }
0x1321   :  { %v218_v15 = vmul.f32 %v1566_v14, %v1271_v3  ;;  %v1241_v3 = vsub.s32 %v1238_v62, %v1240_v0 }
0x1323   :  { %220 = vrot.lane.b32.xlu0 %v218_v15, %s1607_s11 }
0x1395   :  { %v221_v22 = vpop.permute.xlu0 %220 }
0x1396   :  { %v223_v23 = vadd.f32 %v221_v22, %v205_v21 }
0x1398   :  { %1567 = vtanh.f32 %v223_v23 }
0x1399   :  { %1569 = vpow2.f32 %v1273_v28 }
0x13a2   :  { %v1568_v24 = vpop.eup %1567 }
0x13a3   :  { %227 = vrot.lane.b32.xlu0 %v1568_v24, %s1606_s2  ;;  %v1570_v29 = vpop.eup %1569 }
0x13a4   :  { %v213_v30 = vadd.f32 1.0, %v1570_v29 }
0x13a6   :  { %1571 = vrcp.f32 %v213_v30 }
0x13b0   :  { %v1572_v31 = vpop.eup %1571 }
0x13b1   :  { %v225_v32 = vsub.f32 1.0, %v1572_v31 }
0x13d4   :  { %v1038_v25 = vpop.f32.mrb[10].mxu1 }
0x13d5   :  { %v1049_v26 = vadd.f32 %v1038_v25, %v1703_v16  ;;  %v1429_v27 = vpop.f32.mrb[11].mxu1  ;;  %v1042_v34 = vadd.f32 %v1038_v25, %v966_v6 }
0x13d7   :  { %1051 = vrot.lane.b32.xlu1 %v1049_v26, %s1607_s11  ;;  %v1288_v35 = vmul.f32 -1.442695, %v1042_v34 }
0x13d9   :  { %1573 = vpow2.f32 %v1288_v35 }
0x13e3   :  { %v1574_v36 = vpop.eup %1573 }
0x13e4   :  { %v1046_v16 = vadd.f32 1.0, %v1574_v36 }
0x13e6   :  { %1575 = vrcp.f32 %v1046_v16 }
0x13f0   :  { %v1576_v37 = vpop.eup %1575 }
0x13f1   :  { %v1061_v50 = vsub.f32 1.0, %v1576_v37  ;;  %v1067_v52 = vmul.f32 %v1576_v37, %v1832_v2 }
0x1415   :  { %v228_v1 = vpop.permute.xlu0 %227 }
0x1416   :  { %v230_v33 = vmul.f32 %v228_v1, %v225_v32 }
0x1418   :  { %1439 = vmatmul.mubr.msk.f32.vlgmr.msra.gmra.mrb[20].mxu0 %vm236_vm4, %v230_v33 }
0x1449   :  { %v1052_v12 = vpop.permute.xlu1 %1051 }
0x144a   :  { %v1054_v38 = vmul.f32 %v1576_v37, %v1052_v12 }
0x144c   :  { %1056 = vrot.lane.b32.xlu1 %v1054_v38, %s1607_s11  ;;  %s1252_s11 = sshll.u32 %s1609_s3, 4  ;;  %s1253_s11 = int_to_ptr.vmem [resolvable:$true] %s1252_s11 }
0x144d   :  { %s1583_s17 = scalar_lea.vmem %s1253_s11, 32  ;;  %p1584_p1 = scmp.lt.s32.totalorder %s1253_s11, %s1253_s11 }
0x14be   :  { %v1057_v39 = vpop.permute.xlu1 %1056 }
0x14bf   :  { %v1059_v40 = vadd.f32 %v1057_v39, %v966_v6 }
0x14c1   :  { %1577 = vtanh.f32 %v1059_v40 }
0x14cb   :  { %v1578_v47 = vpop.eup %1577 }
0x14cc   :  { %1063 = vrot.lane.b32.xlu1 %v1578_v47, %s1606_s2 }
0x14eb   :  { %v1146_v48 = vpop.f32.mrb[20].mxu0 }
0x14ec   :  { %v1440_v49 = vpop.f32.mrb[21].mxu0 }
0x153e   :  { %v1064_v51 = vpop.permute.xlu1 %1063 }
0x153f   :  { %v1066_v53 = vmul.f32 %v1064_v51, %v1061_v50 }
0x1541   :  { %v1068_v54 = vadd.f32 %v1067_v52, %v1066_v53 }
0x1543   :  { %1151 = vrot.lane.b32.xlu1 %v1068_v54, %s1606_s2  ;;  %s1579_s2 = scalar_lea.vmem %s1253_s11, 16 }
0x1544   :  { %p1580_p0 = scmp.ne.s32.totalorder %s1253_s11, %s1579_s2  ;;  %p1585_p2 = scmp.lt.s32.totalorder %s1583_s17, %s1579_s2 }
0x1546   :  { %p1586_p3 = por %p1585_p2, %p1584_p1 }
0x1548   :  { %p1587_p4 = pnand %p1586_p3, %p1580_p0 }
0x15b5   :  { %v1152_v55 = vpop.permute.xlu1 %1151 }
0x15b6   :  { %1450 = vmatmul.mubr.msk.f32.vlgmr.msra.gmra.mrb[12].mxu1 %vm236_vm4, %v1152_v55 }
0x1689   :  { %v1221_v4 = vpop.f32.mrb[12].mxu1 }
0x168a   :  { %v1222_v58 = vadd.f32 %v1221_v4, %v1146_v48  ;;  %v1451_v59 = vpop.f32.mrb[13].mxu1 }
0x168c   :  { %v1232_v60 = vadd.f32 %v1291_v57, %v1222_v58 }
0x168e   :  { %1235 = vperm.xlu0 %1519, %v1232_v60  }
0x170d   :  { %v1236_v2 = vpop.permute.xlu0 %1235 }
0x170e   :  { %v1242_v11 = vrot.slane %v1236_v2, %v1241_v3 }
0x1710   :  { %1245 = vst.msk [vmem:[#allocation4] sm:$0x1] %vm1244_vm5, %v1242_v11 }
0x1711   :  { %1590 = shalt.err (!%p1587_p4)
}
0x1712   :  { %s1591_s20 = scalar_lea.hbm %s1899_s6, 16 }
0x1713   :  { %p1592_p5 = scmp.ne.s32.totalorder %s1899_s6, %s1591_s20  ;;  %p1595_p6 = scmp.lt.u32.totalorder %s1591_s20, %s1899_s6 }
0x1715   :  { %p1597_p7 = pnand %p1595_p6, %p1592_p5 }
0x1717   :  { %1600 = shalt.err (!%p1597_p7)
}
0x1718   :  { %1255 = dma.vmem_to_hbm [thread:$0]  %s1253_s11, 16, %s1899_s6, [#allocation5]  }
0x1719   :  { %1601 = dma.done.wait [#allocation5], 16  }
0x171a   :  { %1602 = vsyncadd [#allocation5], 4294967280 }
0x171b   :  { %1259 = vsyncpa [#allocation5], 1 }

</bundles_post_ra>
